<compile_context>
chip_gen: v7x
topology: tpu7x:2x2x1
jax: 0.10.0
libtpu: 0.0.40
codegen_flags: <defaults>
</compile_context>

<pallas_src>
import functools

import jax
import jax.numpy as jnp
from jax import lax
from jax.experimental import pallas as pl
from jax.experimental.pallas import tpu as pltpu


def _dilconv_glu_kernel(
    x_ref,
    ln1_g_ref, ln1_b_ref,
    w_start_ref, b_start_ref,
    ln2_g_ref, ln2_b_ref,
    w_dil_ref, b_dil_ref,
    ln3_g_ref, ln3_b_ref,
    w_eg_ref, b_eg_ref,
    out_ref,
    *, dilation, negative_slope, eps,
):
  x = x_ref[0].astype(jnp.float32)                       # (C, L), NCL layout
  C, L = x.shape

  def layer_norm(h, g_ref, b_ref):
    # One-pass LN over the channel (sublane) axis; the two reductions are
    # independent rather than a serial mean -> centered-variance chain.
    m = jnp.mean(h, axis=0, keepdims=True)               # (1, L)
    ms = jnp.mean(h * h, axis=0, keepdims=True)          # (1, L)
    inv = lax.rsqrt(ms - m * m + eps)
    return (h - m) * inv * g_ref[...] + b_ref[...]       # (C,1) broadcasts over L

  def leaky(h):
    return jnp.maximum(h, negative_slope * h)            # 1 mul + 1 max

  # start_ln -> leaky_relu -> start_conv1x1 (1x1 conv == W @ h in NCL layout)
  h = jnp.dot(w_start_ref[...],
              leaky(layer_norm(x, ln1_g_ref, ln1_b_ref)),
              preferred_element_type=jnp.float32) + b_start_ref[...]

  # dilconv_ln -> leaky_relu
  h = leaky(layer_norm(h, ln2_g_ref, ln2_b_ref))

  # Causal dilated conv (kernel_size=2, padding=dilation, cropped to first L):
  #   y[:, t] = W0 @ h[:, t-d]  (0 for t < d)  +  W1 @ h[:, t]  + bias
  # fused into a single matmul: [W0 | W1] (C, 2C) @ [h_prev ; h] (2C, L).
  rolled = pltpu.roll(h, shift=dilation, axis=1)         # lane roll (XLU)
  pos = lax.broadcasted_iota(jnp.int32, (1, L), 1)       # tiny (1, L) mask
  h_prev = jnp.where(pos >= dilation, rolled, 0.0)
  h = jnp.dot(w_dil_ref[...],
              jnp.concatenate([h_prev, h], axis=0),
              preferred_element_type=jnp.float32) + b_dil_ref[...]

  # gate_ln -> leaky_relu -> fused GLU (end | gate stacked along output rows)
  h = leaky(layer_norm(h, ln3_g_ref, ln3_b_ref))
  eg = jnp.dot(w_eg_ref[...], h,
               preferred_element_type=jnp.float32) + b_eg_ref[...]   # (2C, L)
  out = eg[:C] * jax.nn.sigmoid(eg[C:]) + x              # residual_connection=True
  out_ref[0] = out.astype(out_ref.dtype)


def dilconv1d_with_glu(x_ncl, params, *, dilation,
                       negative_slope=0.01, eps=1e-5):
  """x_ncl: (B, C, L) float32 (PyTorch Conv1d layout). Returns (B, C, L)."""
  B, C, L = x_ncl.shape

  # Trace-time weight fusion (free for the kernel):
  #   dilated-conv taps side by side -> one K=2C matmul,
  #   end/gate projections stacked   -> one M=2C matmul.
  w_dil = jnp.concatenate([params["w_dil0"], params["w_dil1"]], axis=1)   # (C, 2C)
  w_eg = jnp.concatenate([params["w_end"], params["w_gate"]], axis=0)     # (2C, C)
  b_eg = jnp.concatenate([params["b_end"], params["b_gate"]], axis=0)     # (2C, 1)

  kernel = functools.partial(_dilconv_glu_kernel, dilation=dilation,
                             negative_slope=negative_slope, eps=eps)
  param_spec = pl.BlockSpec(memory_space=pltpu.MemorySpace.VMEM)  # whole array, VMEM

  return pl.pallas_call(
      kernel,
      out_shape=jax.ShapeDtypeStruct((B, C, L), x_ncl.dtype),
      grid=(B,),
      in_specs=[pl.BlockSpec((1, C, L), lambda b: (b, 0, 0))] + [param_spec] * 12,
      out_specs=pl.BlockSpec((1, C, L), lambda b: (b, 0, 0)),
      compiler_params=pltpu.CompilerParams(
          dimension_semantics=("parallel",)),
  )(x_ncl,
    params["ln1_g"], params["ln1_b"],
    params["w_start"], params["b_start"],
    params["ln2_g"], params["ln2_b"],
    w_dil, params["b_dil"],
    params["ln3_g"], params["ln3_b"],
    w_eg, b_eg)


def _reference(x_ncl, p, dilation, negative_slope=0.01, eps=1e-5):
  """Pure-JAX reference mirroring the PyTorch forward (sampling=False)."""
  def ln(h_ncl, g, b):                                   # LayerNorm over channels
    h = jnp.transpose(h_ncl, (0, 2, 1))
    m = jnp.mean(h, -1, keepdims=True)
    v = jnp.mean((h - m) ** 2, -1, keepdims=True)
    h = (h - m) / jnp.sqrt(v + eps) * g[:, 0] + b[:, 0]
    return jnp.transpose(h, (0, 2, 1))

  def leaky(h):
    return jnp.where(h > 0, h, negative_slope * h)

  def conv1x1(h, w, b):                                  # h (B,C,L), w (Co,Ci), b (Co,1)
    return jnp.einsum("oc,bcl->bol", w, h) + b[None]

  x = x_ncl
  h = conv1x1(leaky(ln(x, p["ln1_g"], p["ln1_b"])), p["w_start"], p["b_start"])
  h = leaky(ln(h, p["ln2_g"], p["ln2_b"]))
  B, C, L = h.shape
  h_prev = jnp.concatenate(
      [jnp.zeros((B, C, dilation), h.dtype), h[:, :, :L - dilation]], axis=2)
  h = (jnp.einsum("oc,bcl->bol", p["w_dil0"], h_prev)
       + jnp.einsum("oc,bcl->bol", p["w_dil1"], h) + p["b_dil"][None])
  h = leaky(ln(h, p["ln3_g"], p["ln3_b"]))
  out = (conv1x1(h, p["w_end"], p["b_end"])
         * jax.nn.sigmoid(conv1x1(h, p["w_gate"], p["b_gate"])) + x)
  return out


if __name__ == "__main__":
  B, C, L = 2, 32, 16
  dilation = 2

  key = jax.random.PRNGKey(0)
  ks = jax.random.split(key, 16)

  def nrm(k, shape, scale=1.0):
    return scale * jax.random.normal(k, shape, dtype=jnp.float32)

  s = 1.0 / (C ** 0.5)
  # Conv weights stored as PyTorch's weight[:, :, k]: (C_out, C_in); LN/bias
  # vectors stored as (C, 1) so they broadcast over the kernel's (C, L) tiles.
  params = {
      "ln1_g": 1.0 + 0.1 * nrm(ks[0], (C, 1)), "ln1_b": 0.1 * nrm(ks[1], (C, 1)),
      "w_start": nrm(ks[2], (C, C), s),        "b_start": 0.1 * nrm(ks[3], (C, 1)),
      "ln2_g": 1.0 + 0.1 * nrm(ks[4], (C, 1)), "ln2_b": 0.1 * nrm(ks[5], (C, 1)),
      "w_dil0": nrm(ks[6], (C, C), s),         "w_dil1": nrm(ks[7], (C, C), s),
      "b_dil": 0.1 * nrm(ks[8], (C, 1)),
      "ln3_g": 1.0 + 0.1 * nrm(ks[9], (C, 1)), "ln3_b": 0.1 * nrm(ks[10], (C, 1)),
      "w_end": nrm(ks[11], (C, C), s),         "b_end": 0.1 * nrm(ks[12], (C, 1)),
      "w_gate": nrm(ks[13], (C, C), s),        "b_gate": 0.1 * nrm(ks[14], (C, 1)),
  }
  x = jax.random.normal(ks[15], (B, C, L), dtype=jnp.float32)

  out = jax.block_until_ready(dilconv1d_with_glu(x, params, dilation=dilation))
  ref = _reference(x, params, dilation)

  assert out.shape == (B, C, L)
  max_err = float(jnp.max(jnp.abs(out - ref)))
  assert jnp.allclose(out, ref, atol=1e-4, rtol=1e-4), f"max abs err {max_err}"
  print("KERNEL_OK")
</pallas_src>

<mosaic_0001>
module attributes {stable_mosaic.version = 11 : i64} {
  func.func @_dilconv_glu_kernel(%arg0: i32, %arg1: memref<1x32x16xf32, #tpu.memory_space<vmem>>, %arg2: memref<32x1xf32, #tpu.memory_space<vmem>>, %arg3: memref<32x1xf32, #tpu.memory_space<vmem>>, %arg4: memref<32x32xf32, #tpu.memory_space<vmem>>, %arg5: memref<32x1xf32, #tpu.memory_space<vmem>>, %arg6: memref<32x1xf32, #tpu.memory_space<vmem>>, %arg7: memref<32x1xf32, #tpu.memory_space<vmem>>, %arg8: memref<32x64xf32, #tpu.memory_space<vmem>>, %arg9: memref<32x1xf32, #tpu.memory_space<vmem>>, %arg10: memref<32x1xf32, #tpu.memory_space<vmem>>, %arg11: memref<32x1xf32, #tpu.memory_space<vmem>>, %arg12: memref<64x32xf32, #tpu.memory_space<vmem>>, %arg13: memref<64x1xf32, #tpu.memory_space<vmem>>, %arg14: memref<1x32x16xf32, #tpu.memory_space<vmem>>) attributes {dimension_semantics = [#tpu.dimension_semantics<parallel>], iteration_bounds = array<i64: 2>, scalar_prefetch = 0 : i64, scratch_operands = 0 : i64, tpu.core_type = #tpu.core_type<tc>, window_params = [{transform_indices = @transform_0, window_bounds = array<i64: 1, 32, 16>}, {pipeline_mode = #tpu.pipeline_mode<synchronous>, transform_indices = @transform_1, window_bounds = array<i64: 32, 1>}, {pipeline_mode = #tpu.pipeline_mode<synchronous>, transform_indices = @transform_2, window_bounds = array<i64: 32, 1>}, {pipeline_mode = #tpu.pipeline_mode<synchronous>, transform_indices = @transform_3, window_bounds = array<i64: 32, 32>}, {pipeline_mode = #tpu.pipeline_mode<synchronous>, transform_indices = @transform_4, window_bounds = array<i64: 32, 1>}, {pipeline_mode = #tpu.pipeline_mode<synchronous>, transform_indices = @transform_5, window_bounds = array<i64: 32, 1>}, {pipeline_mode = #tpu.pipeline_mode<synchronous>, transform_indices = @transform_6, window_bounds = array<i64: 32, 1>}, {pipeline_mode = #tpu.pipeline_mode<synchronous>, transform_indices = @transform_7, window_bounds = array<i64: 32, 64>}, {pipeline_mode = #tpu.pipeline_mode<synchronous>, transform_indices = @transform_8, window_bounds = array<i64: 32, 1>}, {pipeline_mode = #tpu.pipeline_mode<synchronous>, transform_indices = @transform_9, window_bounds = array<i64: 32, 1>}, {pipeline_mode = #tpu.pipeline_mode<synchronous>, transform_indices = @transform_10, window_bounds = array<i64: 32, 1>}, {pipeline_mode = #tpu.pipeline_mode<synchronous>, transform_indices = @transform_11, window_bounds = array<i64: 64, 32>}, {pipeline_mode = #tpu.pipeline_mode<synchronous>, transform_indices = @transform_12, window_bounds = array<i64: 64, 1>}, {transform_indices = @transform_13, window_bounds = array<i64: 1, 32, 16>}]} {
    %c0 = arith.constant 0 : index
    %c0_0 = arith.constant 0 : index
    %c0_1 = arith.constant 0 : index
    %0 = vector.load %arg1[%c0, %c0_0, %c0_1] : memref<1x32x16xf32, #tpu.memory_space<vmem>>, vector<1x32x16xf32>
    %1 = vector.shape_cast %0 : vector<1x32x16xf32> to vector<32x16xf32>
    %c0_2 = arith.constant 0 : index
    %c0_3 = arith.constant 0 : index
    %2 = vector.load %arg4[%c0_2, %c0_3] : memref<32x32xf32, #tpu.memory_space<vmem>>, vector<32x32xf32>
    %cst = arith.constant dense<0.000000e+00> : vector<16xf32>
    %3 = vector.multi_reduction <add>, %1, %cst [0] : vector<32x16xf32> to vector<16xf32>
    %4 = vector.shape_cast %3 : vector<16xf32> to vector<1x16xf32>
    %cst_4 = arith.constant 3.200000e+01 : f32
    %5 = vector.broadcast %cst_4 : f32 to vector<1x16xf32>
    %6 = arith.divf %4, %5 : vector<1x16xf32>
    %7 = arith.mulf %1, %1 : vector<32x16xf32>
    %cst_5 = arith.constant dense<0.000000e+00> : vector<16xf32>
    %8 = vector.multi_reduction <add>, %7, %cst_5 [0] : vector<32x16xf32> to vector<16xf32>
    %9 = vector.shape_cast %8 : vector<16xf32> to vector<1x16xf32>
    %cst_6 = arith.constant 3.200000e+01 : f32
    %10 = vector.broadcast %cst_6 : f32 to vector<1x16xf32>
    %11 = arith.divf %9, %10 : vector<1x16xf32>
    %12 = arith.mulf %6, %6 : vector<1x16xf32>
    %13 = arith.subf %11, %12 : vector<1x16xf32>
    %cst_7 = arith.constant 9.99999974E-6 : f32
    %14 = vector.broadcast %cst_7 : f32 to vector<1x16xf32>
    %15 = arith.addf %13, %14 : vector<1x16xf32>
    %16 = math.rsqrt %15 : vector<1x16xf32>
    %17 = vector.broadcast %6 : vector<1x16xf32> to vector<32x16xf32>
    %18 = arith.subf %1, %17 : vector<32x16xf32>
    %19 = vector.broadcast %16 : vector<1x16xf32> to vector<32x16xf32>
    %20 = arith.mulf %18, %19 : vector<32x16xf32>
    %c0_8 = arith.constant 0 : index
    %c0_9 = arith.constant 0 : index
    %21 = vector.load %arg2[%c0_8, %c0_9] : memref<32x1xf32, #tpu.memory_space<vmem>>, vector<32x1xf32>
    %22 = vector.broadcast %21 : vector<32x1xf32> to vector<32x16xf32>
    %23 = arith.mulf %20, %22 : vector<32x16xf32>
    %c0_10 = arith.constant 0 : index
    %c0_11 = arith.constant 0 : index
    %24 = vector.load %arg3[%c0_10, %c0_11] : memref<32x1xf32, #tpu.memory_space<vmem>>, vector<32x1xf32>
    %25 = vector.broadcast %24 : vector<32x1xf32> to vector<32x16xf32>
    %26 = arith.addf %23, %25 : vector<32x16xf32>
    %cst_12 = arith.constant 0.00999999977 : f32
    %27 = vector.broadcast %cst_12 : f32 to vector<32x16xf32>
    %28 = arith.mulf %27, %26 : vector<32x16xf32>
    %29 = arith.maximumf %26, %28 : vector<32x16xf32>
    %cst_13 = arith.constant dense<0.000000e+00> : vector<32x16xf32>
    %30 = tpu.matmul %2, %29, %cst_13 {dimension_numbers = #tpu.dot_dimension_numbers<[1], [0], [0], [1], [0, 0, 1, 1], [], []>} : vector<32x32xf32>, vector<32x16xf32>, vector<32x16xf32> -> vector<32x16xf32>
    %c0_14 = arith.constant 0 : index
    %c0_15 = arith.constant 0 : index
    %31 = vector.load %arg5[%c0_14, %c0_15] : memref<32x1xf32, #tpu.memory_space<vmem>>, vector<32x1xf32>
    %32 = vector.broadcast %31 : vector<32x1xf32> to vector<32x16xf32>
    %33 = arith.addf %30, %32 : vector<32x16xf32>
    %cst_16 = arith.constant dense<0.000000e+00> : vector<16xf32>
    %34 = vector.multi_reduction <add>, %33, %cst_16 [0] : vector<32x16xf32> to vector<16xf32>
    %35 = vector.shape_cast %34 : vector<16xf32> to vector<1x16xf32>
    %cst_17 = arith.constant 3.200000e+01 : f32
    %36 = vector.broadcast %cst_17 : f32 to vector<1x16xf32>
    %37 = arith.divf %35, %36 : vector<1x16xf32>
    %38 = arith.mulf %33, %33 : vector<32x16xf32>
    %cst_18 = arith.constant dense<0.000000e+00> : vector<16xf32>
    %39 = vector.multi_reduction <add>, %38, %cst_18 [0] : vector<32x16xf32> to vector<16xf32>
    %40 = vector.shape_cast %39 : vector<16xf32> to vector<1x16xf32>
    %cst_19 = arith.constant 3.200000e+01 : f32
    %41 = vector.broadcast %cst_19 : f32 to vector<1x16xf32>
    %42 = arith.divf %40, %41 : vector<1x16xf32>
    %43 = arith.mulf %37, %37 : vector<1x16xf32>
    %44 = arith.subf %42, %43 : vector<1x16xf32>
    %cst_20 = arith.constant 9.99999974E-6 : f32
    %45 = vector.broadcast %cst_20 : f32 to vector<1x16xf32>
    %46 = arith.addf %44, %45 : vector<1x16xf32>
    %47 = math.rsqrt %46 : vector<1x16xf32>
    %48 = vector.broadcast %37 : vector<1x16xf32> to vector<32x16xf32>
    %49 = arith.subf %33, %48 : vector<32x16xf32>
    %50 = vector.broadcast %47 : vector<1x16xf32> to vector<32x16xf32>
    %51 = arith.mulf %49, %50 : vector<32x16xf32>
    %c0_21 = arith.constant 0 : index
    %c0_22 = arith.constant 0 : index
    %52 = vector.load %arg6[%c0_21, %c0_22] : memref<32x1xf32, #tpu.memory_space<vmem>>, vector<32x1xf32>
    %53 = vector.broadcast %52 : vector<32x1xf32> to vector<32x16xf32>
    %54 = arith.mulf %51, %53 : vector<32x16xf32>
    %c0_23 = arith.constant 0 : index
    %c0_24 = arith.constant 0 : index
    %55 = vector.load %arg7[%c0_23, %c0_24] : memref<32x1xf32, #tpu.memory_space<vmem>>, vector<32x1xf32>
    %56 = vector.broadcast %55 : vector<32x1xf32> to vector<32x16xf32>
    %57 = arith.addf %54, %56 : vector<32x16xf32>
    %cst_25 = arith.constant 0.00999999977 : f32
    %58 = vector.broadcast %cst_25 : f32 to vector<32x16xf32>
    %59 = arith.mulf %58, %57 : vector<32x16xf32>
    %60 = arith.maximumf %57, %59 : vector<32x16xf32>
    %c2_i32 = arith.constant 2 : i32
    %61 = tpu.dynamic_rotate %60 by %c2_i32 dim 1 : vector<32x16xf32>, i32 -> vector<32x16xf32>
    %62 = tpu.iota {dimensions = array<i32: 1>} : vector<1x16xi32>
    %c2_i32_26 = arith.constant 2 : i32
    %63 = vector.broadcast %c2_i32_26 : i32 to vector<1x16xi32>
    %64 = arith.cmpi sge, %62, %63 : vector<1x16xi32>
    %cst_27 = arith.constant 0.000000e+00 : f32
    %65 = vector.shape_cast %64 : vector<1x16xi1> to vector<1x16xi1>
    %66 = vector.broadcast %65 : vector<1x16xi1> to vector<32x16xi1>
    %67 = vector.broadcast %cst_27 : f32 to vector<32x16xf32>
    %68 = arith.select %66, %61, %67 : vector<32x16xi1>, vector<32x16xf32>
    %c0_28 = arith.constant 0 : index
    %c0_29 = arith.constant 0 : index
    %69 = vector.load %arg8[%c0_28, %c0_29] : memref<32x64xf32, #tpu.memory_space<vmem>>, vector<32x64xf32>
    %70 = tpu.concatenate %68, %60 in 0 : vector<32x16xf32>, vector<32x16xf32> -> vector<64x16xf32>
    %cst_30 = arith.constant dense<0.000000e+00> : vector<32x16xf32>
    %71 = tpu.matmul %69, %70, %cst_30 {dimension_numbers = #tpu.dot_dimension_numbers<[1], [0], [0], [1], [0, 0, 1, 1], [], []>} : vector<32x64xf32>, vector<64x16xf32>, vector<32x16xf32> -> vector<32x16xf32>
    %c0_31 = arith.constant 0 : index
    %c0_32 = arith.constant 0 : index
    %72 = vector.load %arg9[%c0_31, %c0_32] : memref<32x1xf32, #tpu.memory_space<vmem>>, vector<32x1xf32>
    %73 = vector.broadcast %72 : vector<32x1xf32> to vector<32x16xf32>
    %74 = arith.addf %71, %73 : vector<32x16xf32>
    %cst_33 = arith.constant dense<0.000000e+00> : vector<16xf32>
    %75 = vector.multi_reduction <add>, %74, %cst_33 [0] : vector<32x16xf32> to vector<16xf32>
    %76 = vector.shape_cast %75 : vector<16xf32> to vector<1x16xf32>
    %cst_34 = arith.constant 3.200000e+01 : f32
    %77 = vector.broadcast %cst_34 : f32 to vector<1x16xf32>
    %78 = arith.divf %76, %77 : vector<1x16xf32>
    %79 = arith.mulf %74, %74 : vector<32x16xf32>
    %cst_35 = arith.constant dense<0.000000e+00> : vector<16xf32>
    %80 = vector.multi_reduction <add>, %79, %cst_35 [0] : vector<32x16xf32> to vector<16xf32>
    %81 = vector.shape_cast %80 : vector<16xf32> to vector<1x16xf32>
    %cst_36 = arith.constant 3.200000e+01 : f32
    %82 = vector.broadcast %cst_36 : f32 to vector<1x16xf32>
    %83 = arith.divf %81, %82 : vector<1x16xf32>
    %84 = arith.mulf %78, %78 : vector<1x16xf32>
    %85 = arith.subf %83, %84 : vector<1x16xf32>
    %cst_37 = arith.constant 9.99999974E-6 : f32
    %86 = vector.broadcast %cst_37 : f32 to vector<1x16xf32>
    %87 = arith.addf %85, %86 : vector<1x16xf32>
    %88 = math.rsqrt %87 : vector<1x16xf32>
    %89 = vector.broadcast %78 : vector<1x16xf32> to vector<32x16xf32>
    %90 = arith.subf %74, %89 : vector<32x16xf32>
    %91 = vector.broadcast %88 : vector<1x16xf32> to vector<32x16xf32>
    %92 = arith.mulf %90, %91 : vector<32x16xf32>
    %c0_38 = arith.constant 0 : index
    %c0_39 = arith.constant 0 : index
    %93 = vector.load %arg10[%c0_38, %c0_39] : memref<32x1xf32, #tpu.memory_space<vmem>>, vector<32x1xf32>
    %94 = vector.broadcast %93 : vector<32x1xf32> to vector<32x16xf32>
    %95 = arith.mulf %92, %94 : vector<32x16xf32>
    %c0_40 = arith.constant 0 : index
    %c0_41 = arith.constant 0 : index
    %96 = vector.load %arg11[%c0_40, %c0_41] : memref<32x1xf32, #tpu.memory_space<vmem>>, vector<32x1xf32>
    %97 = vector.broadcast %96 : vector<32x1xf32> to vector<32x16xf32>
    %98 = arith.addf %95, %97 : vector<32x16xf32>
    %cst_42 = arith.constant 0.00999999977 : f32
    %99 = vector.broadcast %cst_42 : f32 to vector<32x16xf32>
    %100 = arith.mulf %99, %98 : vector<32x16xf32>
    %101 = arith.maximumf %98, %100 : vector<32x16xf32>
    %c0_43 = arith.constant 0 : index
    %c0_44 = arith.constant 0 : index
    %102 = vector.load %arg12[%c0_43, %c0_44] : memref<64x32xf32, #tpu.memory_space<vmem>>, vector<64x32xf32>
    %cst_45 = arith.constant dense<0.000000e+00> : vector<64x16xf32>
    %103 = tpu.matmul %102, %101, %cst_45 {dimension_numbers = #tpu.dot_dimension_numbers<[1], [0], [0], [1], [0, 0, 1, 1], [], []>} : vector<64x32xf32>, vector<32x16xf32>, vector<64x16xf32> -> vector<64x16xf32>
    %c0_46 = arith.constant 0 : index
    %c0_47 = arith.constant 0 : index
    %104 = vector.load %arg13[%c0_46, %c0_47] : memref<64x1xf32, #tpu.memory_space<vmem>>, vector<64x1xf32>
    %105 = vector.broadcast %104 : vector<64x1xf32> to vector<64x16xf32>
    %106 = arith.addf %103, %105 : vector<64x16xf32>
    %107 = vector.extract_strided_slice %106 {offsets = [0, 0], sizes = [32, 16], strides = [1, 1]} : vector<64x16xf32> to vector<32x16xf32>
    %108 = vector.extract_strided_slice %106 {offsets = [32, 0], sizes = [32, 16], strides = [1, 1]} : vector<64x16xf32> to vector<32x16xf32>
    %109 = arith.negf %108 : vector<32x16xf32>
    %110 = math.exp %109 : vector<32x16xf32>
    %cst_48 = arith.constant 1.000000e+00 : f32
    %111 = vector.broadcast %cst_48 : f32 to vector<32x16xf32>
    %112 = arith.addf %111, %110 : vector<32x16xf32>
    %113 = arith.divf %111, %112 : vector<32x16xf32>
    %114 = arith.mulf %107, %113 : vector<32x16xf32>
    %115 = arith.addf %114, %1 : vector<32x16xf32>
    %c0_49 = arith.constant 0 : index
    %c0_50 = arith.constant 0 : index
    %c0_51 = arith.constant 0 : index
    %116 = vector.load %arg14[%c0_49, %c0_50, %c0_51] : memref<1x32x16xf32, #tpu.memory_space<vmem>>, vector<1x32x16xf32>
    %117 = vector.shape_cast %116 : vector<1x32x16xf32> to vector<32x16xf32>
    %118 = vector.shape_cast %115 : vector<32x16xf32> to vector<1x32x16xf32>
    tpu.vector_store %arg14[%c0_49, %c0_50, %c0_51], %118 {strides = array<i32>} : memref<1x32x16xf32, #tpu.memory_space<vmem>>, vector<1x32x16xf32>,
    return
  }
  func.func @transform_0(%arg0: i32) -> (i32, i32, i32) {
    %c0_i32 = arith.constant 0 : i32
    %c0_i32_0 = arith.constant 0 : i32
    %c0_i32_1 = arith.constant 0 : i32
    return %arg0, %c0_i32, %c0_i32_0 : i32, i32, i32
  }
  func.func @transform_1(%arg0: i32) -> (i32, i32) {
    %c0_i32 = arith.constant 0 : i32
    %c0_i32_0 = arith.constant 0 : i32
    %c0_i32_1 = arith.constant 0 : i32
    return %c0_i32, %c0_i32_0 : i32, i32
  }
  func.func @transform_2(%arg0: i32) -> (i32, i32) {
    %c0_i32 = arith.constant 0 : i32
    %c0_i32_0 = arith.constant 0 : i32
    %c0_i32_1 = arith.constant 0 : i32
    return %c0_i32, %c0_i32_0 : i32, i32
  }
  func.func @transform_3(%arg0: i32) -> (i32, i32) {
    %c0_i32 = arith.constant 0 : i32
    %c0_i32_0 = arith.constant 0 : i32
    %c0_i32_1 = arith.constant 0 : i32
    return %c0_i32, %c0_i32_0 : i32, i32
  }
  func.func @transform_4(%arg0: i32) -> (i32, i32) {
    %c0_i32 = arith.constant 0 : i32
    %c0_i32_0 = arith.constant 0 : i32
    %c0_i32_1 = arith.constant 0 : i32
    return %c0_i32, %c0_i32_0 : i32, i32
  }
  func.func @transform_5(%arg0: i32) -> (i32, i32) {
    %c0_i32 = arith.constant 0 : i32
    %c0_i32_0 = arith.constant 0 : i32
    %c0_i32_1 = arith.constant 0 : i32
    return %c0_i32, %c0_i32_0 : i32, i32
  }
  func.func @transform_6(%arg0: i32) -> (i32, i32) {
    %c0_i32 = arith.constant 0 : i32
    %c0_i32_0 = arith.constant 0 : i32
    %c0_i32_1 = arith.constant 0 : i32
    return %c0_i32, %c0_i32_0 : i32, i32
  }
  func.func @transform_7(%arg0: i32) -> (i32, i32) {
    %c0_i32 = arith.constant 0 : i32
    %c0_i32_0 = arith.constant 0 : i32
    %c0_i32_1 = arith.constant 0 : i32
    return %c0_i32, %c0_i32_0 : i32, i32
  }
  func.func @transform_8(%arg0: i32) -> (i32, i32) {
    %c0_i32 = arith.constant 0 : i32
    %c0_i32_0 = arith.constant 0 : i32
    %c0_i32_1 = arith.constant 0 : i32
    return %c0_i32, %c0_i32_0 : i32, i32
  }
  func.func @transform_9(%arg0: i32) -> (i32, i32) {
    %c0_i32 = arith.constant 0 : i32
    %c0_i32_0 = arith.constant 0 : i32
    %c0_i32_1 = arith.constant 0 : i32
    return %c0_i32, %c0_i32_0 : i32, i32
  }
  func.func @transform_10(%arg0: i32) -> (i32, i32) {
    %c0_i32 = arith.constant 0 : i32
    %c0_i32_0 = arith.constant 0 : i32
    %c0_i32_1 = arith.constant 0 : i32
    return %c0_i32, %c0_i32_0 : i32, i32
  }
  func.func @transform_11(%arg0: i32) -> (i32, i32) {
    %c0_i32 = arith.constant 0 : i32
    %c0_i32_0 = arith.constant 0 : i32
    %c0_i32_1 = arith.constant 0 : i32
    return %c0_i32, %c0_i32_0 : i32, i32
  }
  func.func @transform_12(%arg0: i32) -> (i32, i32) {
    %c0_i32 = arith.constant 0 : i32
    %c0_i32_0 = arith.constant 0 : i32
    %c0_i32_1 = arith.constant 0 : i32
    return %c0_i32, %c0_i32_0 : i32, i32
  }
  func.func @transform_13(%arg0: i32) -> (i32, i32, i32) {
    %c0_i32 = arith.constant 0 : i32
    %c0_i32_0 = arith.constant 0 : i32
    %c0_i32_1 = arith.constant 0 : i32
    return %arg0, %c0_i32, %c0_i32_0 : i32, i32, i32
  }
}

</mosaic_0001>

<bundles_post_ra>
// kernel: tpu_custom_call.1
= control target key start
LH: loop header
LB: loop body
LE: loop exit
PB: predicated region body
PF: predicated region fallthrough
CT: control target
= control target key end

     0   :  { %s1660_s25 = smov 0   ;;  %s1960_s0 = inlined_call_operand.vmem [shape: f32[2,32,16], index: 0, kind: input, shape index: {}]   ;;  %s1961_s1 = inlined_call_operand.vmem [shape: f32[32,1], index: 1, kind: input, shape index: {}]   ;;  %s1962_s2 = inlined_call_operand.vmem [shape: f32[32,1], index: 2, kind: input, shape index: {}]   ;;  %s1963_s3 = inlined_call_operand.vmem [shape: f32[32,32], index: 3, kind: input, shape index: {}]   ;;  %s1964_s4 = inlined_call_operand.vmem [shape: f32[32,1], index: 4, kind: input, shape index: {}]   ;;  %s1965_s5 = inlined_call_operand.vmem [shape: f32[32,1], index: 5, kind: input, shape index: {}]   ;;  %s1966_s6 = inlined_call_operand.vmem [shape: f32[32,1], index: 6, kind: input, shape index: {}]   ;;  %s1967_s7 = inlined_call_operand.vmem [shape: f32[32,64], index: 7, kind: input, shape index: {}]   ;;  %s1968_s8 = inlined_call_operand.vmem [shape: f32[32,1], index: 8, kind: input, shape index: {}]   ;;  %s1969_s9 = inlined_call_operand.vmem [shape: f32[32,1], index: 9, kind: input, shape index: {}]   ;;  %s1970_s10 = inlined_call_operand.vmem [shape: f32[32,1], index: 10, kind: input, shape index: {}]   ;;  %s1971_s11 = inlined_call_operand.vmem [shape: f32[64,32], index: 11, kind: input, shape index: {}]   ;;  %s1972_s12 = inlined_call_operand.vmem [shape: f32[64,1], index: 12, kind: input, shape index: {}]   ;;  %s1973_s13 = inlined_call_operand.vmem [shape: f32[2,32,16], index: 13, kind: output, shape index: {}]  }
   0x1 LB: > { %s1349_s26 = sadd.s32 4294967295, %s1585_s25   ;;  %p1353_p0 = scmp.ge.s32.totalorder %s1585_s25, 1  ;;  %s1585_s25 = sphi %s1660_s25, %s23_s25  }
   0x2   : > { %p387_p1 = scmp.lt.s32.totalorder %s1585_s25, 3 }
   0x4   : > { %p388_p2 = pnand %p1353_p0, %p387_p1 }
   0x5   : > { %v523_v0 = vld [vmem:[%s1962_s2] sm:$0xff] (!%p388_p2)  ;;  %v1587_v2 = vmov (!%p388_p2), 0   ;;  %v524_v3 = vld [vmem:[%s1962_s2 + $0x8] sm:$0xff] (!%p388_p2)  ;;  %v498_v5 = vld [vmem:[%s1961_s1 + $0x18] sm:$0xff] (!%p388_p2)  ;;  %vm583_vm0 = vcmask (!%p388_p2), 261120   ;;  %p431_p3 = scmp.lt.s32.totalorder (!%p388_p2), %s1349_s26, 1 }
   0x6   : > { %391 = sbr.rel (%p388_p2) target bundleno = 1331 (0x533), region = 72  ;;  %v495_v1 = vld [vmem:[%s1961_s1] sm:$0xff] (!%p388_p2)  ;;  %1526 = vset.pattern.permute.xlu1 (!%p388_p2), %v1587_v2  ;;  %1525 = vset.pattern.permute.xlu0 (!%p388_p2), %v1587_v2  ;;  %v496_v4 = vld [vmem:[%s1961_s1 + $0x8] sm:$0xff] (!%p388_p2)  ;;  %v497_v6 = vld [vmem:[%s1961_s1 + $0x10] sm:$0xff] (!%p388_p2)  ;;  %vm449_vm1 = vcmask (!%p388_p2), 130048   ;;  %s1588_s17 = smov (!%p388_p2), 16  }
   0x7   : > { %529 = vperm.xlu1 (!%p388_p2), %1526, %v523_v0   ;;  %501 = vperm.xlu0 (!%p388_p2), %1525, %v495_v1   ;;  %v526_v7 = vld [vmem:[%s1962_s2 + $0x18] sm:$0xff] (!%p388_p2)  ;;  %v525_v8 = vld [vmem:[%s1962_s2 + $0x10] sm:$0xff] (!%p388_p2)  ;;  %v560_v9 = vld [vmem:[%s1964_s4 + $0x8] sm:$0xff] (!%p388_p2)  ;;  %vm789_vm2 = vcmask (!%p388_p2), 1047680   ;;  %s1589_s18 = smov (!%p388_p2), 114   ;;  %vm867_vm3 = vcmask (!%p388_p2), 523264  }
   0x8   : > { %v559_v10 = vld [vmem:[%s1964_s4] sm:$0xff] (!%p388_p2)  ;;  %v562_v11 = vld [vmem:[%s1964_s4 + $0x18] sm:$0xff] (!%p388_p2)  ;;  %v561_v12 = vld [vmem:[%s1964_s4 + $0x10] sm:$0xff] (!%p388_p2) }
   0x9   : > { %v726_v13 = vld [vmem:[%s1965_s5 + $0x8] sm:$0xff] (!%p388_p2)  ;;  %v725_v14 = vld [vmem:[%s1965_s5] sm:$0xff] (!%p388_p2)  ;;  %v728_v18 = vld [vmem:[%s1965_s5 + $0x18] sm:$0xff] (!%p388_p2) }
   0xa   : > { %v445_v15 = vld [vmem:[%s1963_s3] sm:$0xff] (!%p388_p2)  ;;  %v754_v16 = vld [vmem:[%s1966_s6 + $0x8] sm:$0xff] (!%p388_p2)  ;;  %v727_v19 = vld [vmem:[%s1965_s5 + $0x10] sm:$0xff] (!%p388_p2) }
   0xb   : > { %534 = vperm.xlu1 (!%p388_p2), %1526, %v524_v3   ;;  %506 = vperm.xlu0 (!%p388_p2), %1525, %v496_v4   ;;  %v753_v17 = vld [vmem:[%s1966_s6] sm:$0xff] (!%p388_p2)  ;;  %v756_v20 = vld [vmem:[%s1966_s6 + $0x18] sm:$0xff] (!%p388_p2)  ;;  %v755_v21 = vld [vmem:[%s1966_s6 + $0x10] sm:$0xff] (!%p388_p2) }
   0xc   : > { %1426 = vmatprep.mubr.msk.f32.mxu0 (!%p388_p2), %vm583_vm0, %v445_v15 }
   0xd   : > { %s1975_s26 = smov (!%p431_p3, %s1349_s26), 1 }
   0xe   : > { %s1384_s22 = sshll.u32 %s1975_s26, 5 }
   0xf   : > { %516 = vperm.xlu1 %1526, %v498_v5   ;;  %511 = vperm.xlu0 %1525, %v497_v6   ;;  %s435_s27 = scalar_lea.vmem %s1960_s0, %s1384_s22  ;;  %s440_s15 = scalar_lea.vmem %s1973_s13, %s1384_s22 }
  0x10   : > { %v1744_v22 = vld [vmem:[%s435_s27] sm:$0xff]  ;;  %v1746_v23 = vld [vmem:[%s435_s27 + $0x8] sm:$0xff]  ;;  %v1756_v28 = vld [vmem:[%s435_s27 + $0x10] sm:$0xff] }
  0x11   : > { %v450_v24 = vsel %vm449_vm1, %v1744_v22, 0.0  ;;  %v451_v25 = vsel %vm449_vm1, %v1746_v23, 0.0  ;;  %v465_v26 = vmul.f32 %v1744_v22, %v1744_v22  ;;  %v466_v27 = vmul.f32 %v1746_v23, %v1746_v23  ;;  %v1764_v34 = vld [vmem:[%s435_s27 + $0x18] sm:$0xff] }
  0x12   : > { %v452_v29 = vadd.f32 %v451_v25, %v450_v24  ;;  %v453_v30 = vsel %vm449_vm1, %v1756_v28, 0.0  ;;  %v467_v31 = vmul.f32 %v1756_v28, %v1756_v28  ;;  %v455_v37 = vsel %vm449_vm1, %v1764_v34, 0.0 }
  0x13   : > { %544 = vperm.xlu1 %1526, %v526_v7   ;;  %539 = vperm.xlu0 %1525, %v525_v8   ;;  %v469_v32 = vsel %vm449_vm1, %v465_v26, 0.0  ;;  %v470_v33 = vsel %vm449_vm1, %v466_v27, 0.0  ;;  %v468_v38 = vmul.f32 %v1764_v34, %v1764_v34 }
  0x14   : > { %v454_v35 = vadd.f32 %v453_v30, %v452_v29  ;;  %v471_v36 = vadd.f32 %v470_v33, %v469_v32  ;;  %v472_v39 = vsel %vm449_vm1, %v467_v31, 0.0 }
  0x15   : > { %v474_v42 = vsel %vm449_vm1, %v468_v38, 0.0  ;;  %v448_v38 = vld [vmem:[%s1963_s3 + $0x18] sm:$0xff] }
  0x16   : > { %v456_v40 = vadd.f32 %v455_v37, %v454_v35  ;;  %v473_v41 = vadd.f32 %v472_v39, %v471_v36  ;;  %v446_v36 = vld [vmem:[%s1963_s3 + $0x8] sm:$0xff]  ;;  %v447_v37 = vld [vmem:[%s1963_s3 + $0x10] sm:$0xff] }
  0x17   : > { %570 = vperm.xlu1 %1526, %v560_v9   ;;  %565 = vperm.xlu0 %1525, %v559_v10  }
  0x18   : > { %v457_v43 = vrot.slane %v456_v40, 4  ;;  %v475_v44 = vadd.f32 %v474_v42, %v473_v41 }
  0x1a   : > { %v458_v45 = vadd.f32 %v457_v43, %v456_v40  ;;  %v476_v46 = vrot.slane %v475_v44, 4 }
  0x1b   : > { %580 = vperm.xlu1 %1526, %v562_v11   ;;  %575 = vperm.xlu0 %1525, %v561_v12  }
  0x1c   : > { %v459_v47 = vrot.slane %v458_v45, 2  ;;  %v477_v48 = vadd.f32 %v476_v46, %v475_v44 }
  0x1e   : > { %v460_v49 = vadd.f32 %v459_v47, %v458_v45  ;;  %v478_v50 = vrot.slane %v477_v48, 2 }
  0x1f   : > { %736 = vperm.xlu1 %1526, %v726_v13   ;;  %731 = vperm.xlu0 %1525, %v725_v14  }
  0x20   : > { %v461_v51 = vrot.slane %v460_v49, 1  ;;  %v479_v52 = vadd.f32 %v478_v50, %v477_v48 }
  0x22   : > { %v462_v53 = vadd.f32 %v461_v51, %v460_v49  ;;  %v480_v54 = vrot.slane %v479_v52, 1 }
  0x23   : > { %764 = vperm.xlu1 %1526, %v754_v16   ;;  %759 = vperm.xlu0 %1525, %v753_v17  }
  0x24   : > { %v464_v55 = vmul.f32 0.03125, %v462_v53  ;;  %v481_v56 = vadd.f32 %v480_v54, %v479_v52 }
  0x26   : > { %v482_v57 = vmul.f32 0.03125, %v481_v56  ;;  %v483_v58 = vmul.f32 %v464_v55, %v464_v55  ;;  %v487_v61 = vsub.f32 %v1744_v22, %v464_v55  ;;  %v488_v0 = vsub.f32 %v1746_v23, %v464_v55 }
  0x27   : > { %746 = vperm.xlu1 %1526, %v728_v18   ;;  %741 = vperm.xlu0 %1525, %v727_v19   ;;  %v490_v6 = vsub.f32 %v1764_v34, %v464_v55  ;;  %v489_v7 = vsub.f32 %v1756_v28, %v464_v55 }
  0x28   : > { %v484_v59 = vsub.f32 %v482_v57, %v483_v58 }
  0x2a   : > { %v485_v60 = vadd.f32 1e-05, %v484_v59 }
  0x2b   : > { %774 = vperm.xlu1 %1526, %v756_v20   ;;  %769 = vperm.xlu0 %1525, %v755_v21  }
  0x2c   : > { %1557 = vrsqrt.f32 %v485_v60 }
  0x36   : > { %v1558_v62 = vpop.eup %1557 }
  0x37   : > { %v491_v63 = vmul.f32 %v1558_v62, %v487_v61  ;;  %v492_v4 = vmul.f32 %v1558_v62, %v488_v0  ;;  %v494_v13 = vmul.f32 %v1558_v62, %v490_v6  ;;  %v493_v14 = vmul.f32 %v1558_v62, %v489_v7 }
  0x86   : > { %v530_v1 = vpop.permute.xlu1 %529  ;;  %v502_v2 = vpop.permute.xlu0 %501 }
  0x87   : > { %v519_v3 = vmul.f32 %v502_v2, %v491_v63 }
  0x89   : > { %v547_v5 = vadd.f32 %v530_v1, %v519_v3 }
  0x8a   : > { %v535_v8 = vpop.permute.xlu1 %534  ;;  %v507_v9 = vpop.permute.xlu0 %506 }
  0x8b   : > { %v520_v10 = vmul.f32 %v507_v9, %v492_v4  ;;  %v551_v11 = vmul.f32 0.01, %v547_v5 }
  0x8d   : > { %v548_v12 = vadd.f32 %v535_v8, %v520_v10  ;;  %v555_v20 = vmax.f32 %v547_v5, %v551_v11 }
  0x8e   : > { %v517_v15 = vpop.permute.xlu1 %516  ;;  %v512_v16 = vpop.permute.xlu0 %511 }
  0x8f   : > { %v552_v17 = vmul.f32 0.01, %v548_v12  ;;  %v522_v18 = vmul.f32 %v517_v15, %v494_v13  ;;  %v521_v19 = vmul.f32 %v512_v16, %v493_v14 }
  0x91   : > { %v556_v21 = vmax.f32 %v548_v12, %v552_v17 }
  0x92   : > { %v545_v24 = vpop.permute.xlu1 %544  ;;  %v540_v25 = vpop.permute.xlu0 %539 }
  0x93   : > { %v550_v26 = vadd.f32 %v545_v24, %v522_v18  ;;  %v549_v27 = vadd.f32 %v540_v25, %v521_v19  ;;  %v1474_v29 = vpack.c.bf16 %v556_v21, %v555_v20 }
  0x95   : > { %v554_v30 = vmul.f32 0.01, %v550_v26  ;;  %v553_v31 = vmul.f32 0.01, %v549_v27  ;;  %1475 = vmatprep.subr.bf16.mxu0 %v1474_v29 }
  0x96   : > { %1477 = vmatpush3.bf16.msra.mxu0 %v1474_v29  ;;  %v571_v39 = vpop.permute.xlu1 %570  ;;  %v566_v40 = vpop.permute.xlu0 %565 }
  0x97   : > { %v558_v32 = vmax.f32 %v550_v26, %v554_v30  ;;  %v557_v33 = vmax.f32 %v549_v27, %v553_v31 }
  0x99   : > { %v1478_v35 = vpack.c.bf16 %v558_v32, %v557_v33 }
  0x9a   : > { %v581_v47 = vpop.permute.xlu1 %580  ;;  %v576_v51 = vpop.permute.xlu0 %575 }
  0x9b   : > { %1479 = vmatprep.subr.bf16.mxu0 %v1478_v35 }
  0x9c   : > { %1481 = vmatpush3.bf16.msra.mxu0 %v1478_v35 }
  0x9e   : > { %v737_v26 = vpop.permute.xlu1 %736  ;;  %v732_v27 = vpop.permute.xlu0 %731 }
  0x9f   : > { %1427 = vmatmul.mubr.msk.f32.vlgmr.msra.gmra.mrb[0].mxu0 %vm583_vm0, %v446_v36 }
  0xa0   : > { %1429 = vmatprep.mubr.msk.f32.mxu0 %vm583_vm0, %v447_v37 }
  0xa2   : > { %v765_v31 = vpop.permute.xlu1 %764  ;;  %v760_v32 = vpop.permute.xlu0 %759 }
  0xa3   : > { %1430 = vmatmul.mubr.msk.f32.gmra.mrb[2].mxu0 %vm583_vm0, %v448_v38 }
  0xa6   : > { %v747_v33 = vpop.permute.xlu1 %746  ;;  %v742_v35 = vpop.permute.xlu0 %741 }
 0x172   : > { %v1428_v41 = vpop.f32.mrb[0].mxu0 }
 0x173   : > { %v668_v42 = vadd.f32 %v1428_v41, %v571_v39  ;;  %v662_v43 = vpop.f32.mrb[1].mxu0 }
 0x174   : > { %v663_v44 = vadd.f32 %v662_v43, %v566_v40 }
 0x175   : > { %v682_v45 = vsel %vm449_vm1, %v668_v42, 0.0  ;;  %v696_v46 = vmul.f32 %v668_v42, %v668_v42 }
 0x176   : > { %v681_v48 = vsel %vm449_vm1, %v663_v44, 0.0  ;;  %v695_v49 = vmul.f32 %v663_v44, %v663_v44  ;;  %v1431_v50 = vpop.f32.mrb[2].mxu0 }
 0x177   : > { %v700_v52 = vsel %vm449_vm1, %v696_v46, 0.0  ;;  %v683_v53 = vadd.f32 %v682_v45, %v681_v48  ;;  %v678_v54 = vadd.f32 %v1431_v50, %v581_v47  ;;  %v672_v55 = vpop.f32.mrb[3].mxu0 }
 0x178   : > { %v699_v56 = vsel %vm449_vm1, %v695_v49, 0.0  ;;  %v673_v57 = vadd.f32 %v672_v55, %v576_v51 }
 0x179   : > { %v701_v58 = vadd.f32 %v700_v52, %v699_v56  ;;  %v698_v59 = vmul.f32 %v678_v54, %v678_v54  ;;  %v686_v63 = vsel %vm449_vm1, %v678_v54, 0.0 }
 0x17a   : > { %v684_v60 = vsel %vm449_vm1, %v673_v57, 0.0  ;;  %v697_v61 = vmul.f32 %v673_v57, %v673_v57 }
 0x17b   : > { %v685_v62 = vadd.f32 %v684_v60, %v683_v53  ;;  %v704_v3 = vsel %vm449_vm1, %v698_v59, 0.0 }
 0x17c   : > { %v702_v0 = vsel %vm449_vm1, %v697_v61, 0.0 }
 0x17d   : > { %v687_v1 = vadd.f32 %v686_v63, %v685_v62  ;;  %v703_v2 = vadd.f32 %v702_v0, %v701_v58 }
 0x17f   : > { %v688_v4 = vrot.slane %v687_v1, 4  ;;  %v705_v5 = vadd.f32 %v704_v3, %v703_v2 }
 0x181   : > { %v689_v6 = vadd.f32 %v688_v4, %v687_v1  ;;  %v706_v7 = vrot.slane %v705_v5, 4 }
 0x183   : > { %v690_v8 = vrot.slane %v689_v6, 2  ;;  %v707_v9 = vadd.f32 %v706_v7, %v705_v5 }
 0x185   : > { %v691_v10 = vadd.f32 %v690_v8, %v689_v6  ;;  %v708_v11 = vrot.slane %v707_v9, 2 }
 0x187   : > { %v692_v12 = vrot.slane %v691_v10, 1  ;;  %v709_v13 = vadd.f32 %v708_v11, %v707_v9 }
 0x189   : > { %v693_v14 = vadd.f32 %v692_v12, %v691_v10  ;;  %v710_v15 = vrot.slane %v709_v13, 1 }
 0x18b   : > { %v694_v16 = vmul.f32 0.03125, %v693_v14  ;;  %v711_v17 = vadd.f32 %v710_v15, %v709_v13 }
 0x18d   : > { %v712_v18 = vmul.f32 0.03125, %v711_v17  ;;  %v713_v19 = vmul.f32 %v694_v16, %v694_v16  ;;  %v719_v20 = vsub.f32 %v673_v57, %v694_v16  ;;  %v720_v21 = vsub.f32 %v678_v54, %v694_v16 }
 0x18e   : > { %v717_v24 = vsub.f32 %v663_v44, %v694_v16  ;;  %v718_v25 = vsub.f32 %v668_v42, %v694_v16  ;;  %v775_v44 = vpop.permute.xlu1 %774  ;;  %v770_v42 = vpop.permute.xlu0 %769 }
 0x18f   : > { %v714_v29 = vsub.f32 %v712_v18, %v713_v19 }
 0x191   : > { %v715_v30 = vadd.f32 1e-05, %v714_v29  ;;  %v1010_v29 = vld [vmem:[%s1969_s9 + $0x8] sm:$0xff] }
 0x193   : > { %1559 = vrsqrt.f32 %v715_v30  ;;  %v1009_v30 = vld [vmem:[%s1969_s9] sm:$0xff] }
 0x19d   : > { %v1560_v36 = vpop.eup %1559 }
 0x19e   : > { %v723_v37 = vmul.f32 %v1560_v36, %v719_v20  ;;  %v724_v38 = vmul.f32 %v1560_v36, %v720_v21  ;;  %v721_v39 = vmul.f32 %v1560_v36, %v717_v24  ;;  %v722_v40 = vmul.f32 %v1560_v36, %v718_v25  ;;  %v844_v21 = vld [vmem:[%s1968_s8 + $0x8] sm:$0xff]  ;;  %v843_v24 = vld [vmem:[%s1968_s8] sm:$0xff]  ;;  %v846_v25 = vld [vmem:[%s1968_s8 + $0x18] sm:$0xff] }
 0x19f   : > { %v1040_v36 = vld [vmem:[%s1970_s10 + $0x18] sm:$0xff] }
 0x1a0   : > { %v751_v41 = vmul.f32 %v742_v35, %v723_v37  ;;  %v752_v43 = vmul.f32 %v747_v33, %v724_v38  ;;  %v749_v45 = vmul.f32 %v732_v27, %v721_v39  ;;  %v750_v46 = vmul.f32 %v737_v26, %v722_v40  ;;  %v839_v26 = vld [vmem:[%s1967_s7] sm:$0xff]  ;;  %v845_v27 = vld [vmem:[%s1968_s8 + $0x10] sm:$0xff]  ;;  %v1012_v33 = vld [vmem:[%s1969_s9 + $0x18] sm:$0xff] }
 0x1a1   : > { %1448 = vmatprep.mubr.msk.f32.mxu1 %vm867_vm3, %v839_v26  ;;  %v1011_v35 = vld [vmem:[%s1969_s9 + $0x10] sm:$0xff]  ;;  %v1086_v38 = vld [vmem:[%s1972_s12 + $0x28] sm:$0xff]  ;;  %v1085_v39 = vld [vmem:[%s1972_s12 + $0x20] sm:$0xff] }
 0x1a2   : > { %v779_v47 = vadd.f32 %v770_v42, %v751_v41  ;;  %v780_v48 = vadd.f32 %v775_v44, %v752_v43  ;;  %v777_v49 = vadd.f32 %v760_v32, %v749_v45  ;;  %v778_v50 = vadd.f32 %v765_v31, %v750_v46  ;;  %v1038_v31 = vld [vmem:[%s1970_s10 + $0x8] sm:$0xff]  ;;  %v1037_v32 = vld [vmem:[%s1970_s10] sm:$0xff]  ;;  %v1039_v37 = vld [vmem:[%s1970_s10 + $0x10] sm:$0xff] }
 0x1a3   : > { %v1088_v40 = vld [vmem:[%s1972_s12 + $0x38] sm:$0xff]  ;;  %v1087_v41 = vld [vmem:[%s1972_s12 + $0x30] sm:$0xff]  ;;  %v1082_v43 = vld [vmem:[%s1972_s12 + $0x8] sm:$0xff]  ;;  %v814_v42 = vlaneseq }
 0x1a4   : > { %v783_v51 = vmul.f32 0.01, %v779_v47  ;;  %v784_v52 = vmul.f32 0.01, %v780_v48  ;;  %v781_v53 = vmul.f32 0.01, %v777_v49 }
 0x1a5   : > { %v782_v54 = vmul.f32 0.01, %v778_v50  ;;  %v1081_v45 = vld [vmem:[%s1972_s12] sm:$0xff]  ;;  %v1084_v46 = vld [vmem:[%s1972_s12 + $0x18] sm:$0xff]  ;;  %v1083_v44 = vld [vmem:[%s1972_s12 + $0x10] sm:$0xff] }
 0x1a6   : > { %v1796_v55 = vmax.f32 %v779_v47, %v783_v51  ;;  %v1798_v56 = vmax.f32 %v780_v48, %v784_v52  ;;  %v1800_v57 = vmax.f32 %v777_v49, %v781_v53  ;;  %v815_v47 = vand.u32 127, %v814_v42 }
 0x1a7   : > { %v1802_v58 = vmax.f32 %v778_v50, %v782_v54 }
 0x1a8   : > { %v1532_v59 = vpack.i.bf16 %v1798_v56, %v1796_v55  ;;  %vm816_vm4 = vcmp.ge.s32.totalorder %v815_v47, 2 }
 0x1a9   : > { %v1527_v60 = vpack.i.bf16 %v1802_v58, %v1800_v57  ;;  %vm1483_vm5 = vmpackc.low %vm816_vm4, %vm816_vm4 }
 0x1aa   : > { %1533 = vrot.lane.b32.xlu1 %v1532_v59, %s1588_s17 }
 0x1ab   : > { %1528 = vrot.lane.b32.xlu0 %v1527_v60, %s1588_s17  ;;  %v1494_v60 = vpack.c.bf16 %v1802_v58, %v1800_v57 }
 0x21c   : > { %v1534_v61 = vpop.permute.xlu1 %1533 }
 0x21d   : > { %v1536_v62 = vunpack.i.h.bf16 %v1534_v61  ;;  %v1535_v63 = vunpack.i.l.bf16 %v1534_v61  ;;  %v1529_v0 = vpop.permute.xlu0 %1528  ;;  %v1498_v61 = vpack.c.bf16 %v1798_v56, %v1796_v55 }
 0x21e   : > { %v1531_v1 = vunpack.i.h.bf16 %v1529_v0  ;;  %v1530_v2 = vunpack.i.l.bf16 %v1529_v0 }
 0x21f   : > { %v798_v3 = vsel %vm789_vm2, %v1535_v63, %v1796_v55  ;;  %v801_v4 = vsel %vm789_vm2, %v1536_v62, %v1798_v56  ;;  %v840_v62 = vld [vmem:[%s1967_s7 + $0x8] sm:$0xff]  ;;  %v841_v63 = vld [vmem:[%s1967_s7 + $0x10] sm:$0xff] }
 0x220   : > { %v1542_v5 = vpack.i.bf16 %v801_v4, %v798_v3  ;;  %v792_v6 = vsel %vm789_vm2, %v1530_v2, %v1800_v57  ;;  %v795_v7 = vsel %vm789_vm2, %v1531_v1, %v1802_v58 }
 0x221   : > { %v1537_v8 = vpack.i.bf16 %v795_v7, %v792_v6 }
 0x222   : > { %1543 = vrot.lane.b32.xlu1 %v1542_v5, %s1588_s17 }
 0x223   : > { %1538 = vrot.lane.b32.xlu0 %v1537_v8, %s1588_s17 }
 0x294   : > { %v1544_v9 = vpop.permute.xlu1 %1543 }
 0x295   : > { %v1546_v10 = vunpack.i.h.bf16 %v1544_v9  ;;  %v1545_v11 = vunpack.i.l.bf16 %v1544_v9  ;;  %v1539_v12 = vpop.permute.xlu0 %1538 }
 0x296   : > { %v1541_v13 = vunpack.i.h.bf16 %v1539_v12  ;;  %v1540_v14 = vunpack.i.l.bf16 %v1539_v12 }
 0x297   : > { %v812_v15 = vsel %vm789_vm2, %v1545_v11, %v1796_v55  ;;  %v813_v16 = vsel %vm789_vm2, %v1546_v10, %v1798_v56  ;;  %v1073_v55 = vld [vmem:[%s1971_s11] sm:$0xff]  ;;  %v1079_v56 = vld [vmem:[%s1971_s11 + $0x30] sm:$0xff] }
 0x298   : > { %v1552_v17 = vpack.i.bf16 %v813_v16, %v812_v15  ;;  %v810_v18 = vsel %vm789_vm2, %v1540_v14, %v1800_v57  ;;  %v811_v19 = vsel %vm789_vm2, %v1541_v13, %v1802_v58  ;;  %v842_v57 = vld [vmem:[%s1967_s7 + $0x18] sm:$0xff]  ;;  %1462 = vmatprep.mubr.msk.f32.mxu0 %vm583_vm0, %v1073_v55 }
 0x299   : > { %v1547_v20 = vpack.i.bf16 %v811_v19, %v810_v18 }
 0x29a   : > { %1553 = vrot.lane.b32.xlu1 %v1552_v17, %s1589_s18 }
 0x29b   : > { %1548 = vrot.lane.b32.xlu0 %v1547_v20, %s1589_s18 }
 0x29e   : > { %854 = vperm.xlu1 %1526, %v844_v21  }
 0x29f   : > { %849 = vperm.xlu0 %1525, %v843_v24  }
 0x2a2   : > { %864 = vperm.xlu1 %1526, %v846_v25  }
 0x2a3   : > { %859 = vperm.xlu0 %1525, %v845_v27  }
 0x2a6   : > { %1020 = vperm.xlu1 %1526, %v1010_v29  }
 0x2a7   : > { %1015 = vperm.xlu0 %1525, %v1009_v30  }
 0x2aa   : > { %1048 = vperm.xlu1 %1526, %v1038_v31  }
 0x2ab   : > { %1043 = vperm.xlu0 %1525, %v1037_v32  }
 0x2ae   : > { %1030 = vperm.xlu1 %1526, %v1012_v33  }
 0x2af   : > { %1025 = vperm.xlu0 %1525, %v1011_v35  }
 0x2b2   : > { %1058 = vperm.xlu1 %1526, %v1040_v36  }
 0x2b3   : > { %1053 = vperm.xlu0 %1525, %v1039_v37  }
 0x2b6   : > { %1116 = vperm.xlu1 %1526, %v1086_v38  }
 0x2b7   : > { %1111 = vperm.xlu0 %1525, %v1085_v39  }
 0x2ba   : > { %1126 = vperm.xlu1 %1526, %v1088_v40  }
 0x2bb   : > { %1121 = vperm.xlu0 %1525, %v1087_v41  }
 0x2be   : > { %1096 = vperm.xlu1 %1526, %v1082_v43  }
 0x2bf   : > { %1091 = vperm.xlu0 %1525, %v1081_v45  }
 0x2c2   : > { %1106 = vperm.xlu1 %1526, %v1084_v46  }
 0x2c3   : > { %1101 = vperm.xlu0 %1525, %v1083_v44  }
 0x30c   : > { %v1554_v48 = vpop.permute.xlu1 %1553 }
 0x30d   : > { %v1549_v49 = vpop.permute.xlu0 %1548  ;;  %v1556_v50 = vunpack.i.h.bf16 %v1554_v48  ;;  %v1555_v51 = vunpack.i.l.bf16 %v1554_v48 }
 0x30e   : > { %v1551_v52 = vunpack.i.h.bf16 %v1549_v49  ;;  %v1550_v53 = vunpack.i.l.bf16 %v1549_v49 }
 0x30f   : > { %v1488_v59 = vpack.c.bf16 %v1556_v50, %v1555_v51 }
 0x310   : > { %v1482_v54 = vpack.c.bf16 %v1551_v52, %v1550_v53 }
 0x312   : > { %1484 = vmatprep.subr.msk.bf16.mxu1 %vm1483_vm5, %v1482_v54 }
 0x313   : > { %1487 = vmatpush3.bf16.msk.msra.mxu1 %vm1483_vm5, %v1482_v54 }
 0x314   : > { %1490 = vmatprep.subr.msk.bf16.mxu1 %vm1483_vm5, %v1488_v59 }
 0x317   : > { %1493 = vmatpush3.bf16.msk.msra.mxu1 %vm1483_vm5, %v1488_v59 }
 0x318   : > { %1495 = vmatprep.subr.bf16.mxu1 %v1494_v60 }
 0x31b   : > { %1497 = vmatpush3.bf16.msra.mxu1 %v1494_v60 }
 0x31c   : > { %1499 = vmatprep.subr.bf16.mxu1 %v1498_v61 }
 0x31d   : > { %v855_v58 = vpop.permute.xlu1 %854 }
 0x31e   : > { %v850_v0 = vpop.permute.xlu0 %849 }
 0x31f   : > { %1501 = vmatpush3.bf16.msra.mxu1 %v1498_v61 }
 0x321   : > { %v865_v7 = vpop.permute.xlu1 %864 }
 0x322   : > { %1449 = vmatmul.mubr.msk.f32.vlgmr.msra.gmra.mrb[0].mxu1 %vm867_vm3, %v840_v62  ;;  %v860_v11 = vpop.permute.xlu0 %859 }
 0x323   : > { %1451 = vmatprep.mubr.msk.f32.mxu1 %vm867_vm3, %v841_v63 }
 0x325   : > { %v1021_v52 = vpop.permute.xlu1 %1020 }
 0x326   : > { %1452 = vmatmul.mubr.msk.f32.gmra.mrb[2].mxu1 %vm867_vm3, %v842_v57  ;;  %v1016_v53 = vpop.permute.xlu0 %1015 }
 0x327   : > { %1471 = vmatprep.mubr.msk.f32.mxu1 %vm583_vm0, %v1079_v56 }
 0x329   : > { %v1049_v60 = vpop.permute.xlu1 %1048 }
 0x32a   : > { %v1044_v61 = vpop.permute.xlu0 %1043 }
 0x32d   : > { %v1031_v62 = vpop.permute.xlu1 %1030 }
 0x32e   : > { %v1026_v63 = vpop.permute.xlu0 %1025 }
 0x3f5   : > { %v1450_v1 = vpop.f32.mrb[0].mxu1 }
 0x3f6   : > { %v952_v2 = vadd.f32 %v1450_v1, %v855_v58  ;;  %v946_v3 = vpop.f32.mrb[1].mxu1 }
 0x3f7   : > { %v947_v4 = vadd.f32 %v946_v3, %v850_v0 }
 0x3f8   : > { %v966_v5 = vsel %vm449_vm1, %v952_v2, 0.0  ;;  %v980_v6 = vmul.f32 %v952_v2, %v952_v2 }
 0x3f9   : > { %v965_v8 = vsel %vm449_vm1, %v947_v4, 0.0  ;;  %v979_v9 = vmul.f32 %v947_v4, %v947_v4  ;;  %v1453_v10 = vpop.f32.mrb[2].mxu1 }
 0x3fa   : > { %v984_v12 = vsel %vm449_vm1, %v980_v6, 0.0  ;;  %v967_v13 = vadd.f32 %v966_v5, %v965_v8  ;;  %v962_v14 = vadd.f32 %v1453_v10, %v865_v7  ;;  %v956_v15 = vpop.f32.mrb[3].mxu1  ;;  %v1054_v6 = vpop.permute.xlu0 %1053 }
 0x3fb   : > { %v983_v16 = vsel %vm449_vm1, %v979_v9, 0.0  ;;  %v957_v17 = vadd.f32 %v956_v15, %v860_v11 }
 0x3fc   : > { %v985_v18 = vadd.f32 %v984_v12, %v983_v16  ;;  %v982_v19 = vmul.f32 %v962_v14, %v962_v14  ;;  %v970_v25 = vsel %vm449_vm1, %v962_v14, 0.0 }
 0x3fd   : > { %v968_v20 = vsel %vm449_vm1, %v957_v17, 0.0  ;;  %v981_v21 = vmul.f32 %v957_v17, %v957_v17 }
 0x3fe   : > { %v969_v24 = vadd.f32 %v968_v20, %v967_v13  ;;  %v988_v30 = vsel %vm449_vm1, %v982_v19, 0.0 }
 0x3ff   : > { %v986_v26 = vsel %vm449_vm1, %v981_v21, 0.0  ;;  %v1074_v21 = vld [vmem:[%s1971_s11 + $0x8] sm:$0xff] }
 0x400   : > { %v971_v27 = vadd.f32 %v970_v25, %v969_v24  ;;  %v987_v29 = vadd.f32 %v986_v26, %v985_v18  ;;  %v1080_v24 = vld [vmem:[%s1971_s11 + $0x38] sm:$0xff]  ;;  %v1075_v25 = vld [vmem:[%s1971_s11 + $0x10] sm:$0xff] }
 0x401   : > { %v1076_v26 = vld [vmem:[%s1971_s11 + $0x18] sm:$0xff] }
 0x402   : > { %v972_v31 = vrot.slane %v971_v27, 4  ;;  %v989_v32 = vadd.f32 %v988_v30, %v987_v29  ;;  %v1078_v29 = vld [vmem:[%s1971_s11 + $0x28] sm:$0xff] }
 0x404   : > { %v973_v33 = vadd.f32 %v972_v31, %v971_v27  ;;  %v990_v35 = vrot.slane %v989_v32, 4  ;;  %v1077_v27 = vld [vmem:[%s1971_s11 + $0x20] sm:$0xff]  ;;  %v1112_v31 = vpop.permute.xlu0 %1111 }
 0x406   : > { %v974_v36 = vrot.slane %v973_v33, 2  ;;  %v991_v37 = vadd.f32 %v990_v35, %v989_v32 }
 0x408   : > { %v975_v38 = vadd.f32 %v974_v36, %v973_v33  ;;  %v992_v39 = vrot.slane %v991_v37, 2  ;;  %v1122_v33 = vpop.permute.xlu0 %1121 }
 0x40a   : > { %v976_v40 = vrot.slane %v975_v38, 1  ;;  %v993_v41 = vadd.f32 %v992_v39, %v991_v37 }
 0x40c   : > { %v977_v43 = vadd.f32 %v976_v40, %v975_v38  ;;  %v994_v45 = vrot.slane %v993_v41, 1 }
 0x40e   : > { %v978_v46 = vmul.f32 0.03125, %v977_v43  ;;  %v995_v44 = vadd.f32 %v994_v45, %v993_v41 }
 0x410   : > { %v996_v42 = vmul.f32 0.03125, %v995_v44  ;;  %v997_v47 = vmul.f32 %v978_v46, %v978_v46  ;;  %v1003_v48 = vsub.f32 %v957_v17, %v978_v46  ;;  %v1001_v49 = vsub.f32 %v947_v4, %v978_v46 }
 0x411   : > { %v1002_v50 = vsub.f32 %v952_v2, %v978_v46  ;;  %v1004_v51 = vsub.f32 %v962_v14, %v978_v46  ;;  %v1059_v2 = vpop.permute.xlu1 %1058 }
 0x412   : > { %v998_v54 = vsub.f32 %v996_v42, %v997_v47 }
 0x414   : > { %v999_v59 = vadd.f32 1e-05, %v998_v54 }
 0x415   : > { %v1117_v30 = vpop.permute.xlu1 %1116 }
 0x416   : > { %1561 = vrsqrt.f32 %v999_v59 }
 0x419   : > { %v1127_v32 = vpop.permute.xlu1 %1126 }
 0x41d   : > { %v1097_v59 = vpop.permute.xlu1 %1096 }
 0x420   : > { %v1562_v57 = vpop.eup %1561 }
 0x421   : > { %v1007_v55 = vmul.f32 %v1562_v57, %v1003_v48  ;;  %v1005_v56 = vmul.f32 %v1562_v57, %v1001_v49  ;;  %v1006_v58 = vmul.f32 %v1562_v57, %v1002_v50  ;;  %v1008_v0 = vmul.f32 %v1562_v57, %v1004_v51 }
 0x423   : > { %v1035_v1 = vmul.f32 %v1026_v63, %v1007_v55  ;;  %v1033_v3 = vmul.f32 %v1016_v53, %v1005_v56  ;;  %v1034_v5 = vmul.f32 %v1021_v52, %v1006_v58  ;;  %v1036_v4 = vmul.f32 %v1031_v62, %v1008_v0  ;;  %v1107_v55 = vpop.permute.xlu1 %1106 }
 0x425   : > { %v1063_v7 = vadd.f32 %v1054_v6, %v1035_v1  ;;  %v1061_v8 = vadd.f32 %v1044_v61, %v1033_v3  ;;  %v1062_v9 = vadd.f32 %v1049_v60, %v1034_v5  ;;  %v1064_v10 = vadd.f32 %v1059_v2, %v1036_v4  ;;  %v1092_v60 = vpop.permute.xlu0 %1091 }
 0x427   : > { %v1065_v11 = vmul.f32 0.01, %v1061_v8  ;;  %v1066_v12 = vmul.f32 0.01, %v1062_v9  ;;  %v1067_v13 = vmul.f32 0.01, %v1063_v7 }
 0x428   : > { %v1068_v14 = vmul.f32 0.01, %v1064_v10 }
 0x429   : > { %v1069_v15 = vmax.f32 %v1061_v8, %v1065_v11  ;;  %v1070_v16 = vmax.f32 %v1062_v9, %v1066_v12  ;;  %v1071_v17 = vmax.f32 %v1063_v7, %v1067_v13  ;;  %v1102_v56 = vpop.permute.xlu0 %1101 }
 0x42a   : > { %v1072_v18 = vmax.f32 %v1064_v10, %v1068_v14 }
 0x42b   : > { %v1502_v19 = vpack.c.bf16 %v1070_v16, %v1069_v15 }
 0x42c   : > { %v1506_v20 = vpack.c.bf16 %v1072_v18, %v1071_v17 }
 0x42d   : > { %1503 = vmatprep.subr.bf16.mxu0 %v1502_v19  ;;  %1510 = vmatprep.subr.bf16.mxu1 %v1502_v19 }
 0x42e   : > { %1505 = vmatpush3.bf16.msra.mxu0 %v1502_v19  ;;  %1512 = vmatpush3.bf16.msra.mxu1 %v1502_v19 }
 0x42f   : > { %1507 = vmatprep.subr.bf16.mxu0 %v1506_v20  ;;  %1511 = vmatprep.subr.bf16.mxu1 %v1506_v20 }
 0x432   : > { %1509 = vmatpush3.bf16.msra.mxu0 %v1506_v20  ;;  %1513 = vmatpush3.bf16.msra.mxu1 %v1506_v20 }
 0x435   : > { %1463 = vmatmul.mubr.msk.f32.vlgmr.msra.gmra.mrb[4].mxu0 %vm583_vm0, %v1074_v21  ;;  %1472 = vmatmul.mubr.msk.f32.vlgmr.msra.gmra.mrb[4].mxu1 %vm583_vm0, %v1080_v24 }
 0x436   : > { %1465 = vmatprep.mubr.msk.f32.mxu0 %vm583_vm0, %v1075_v25 }
 0x439   : > { %1466 = vmatmul.mubr.msk.f32.gmra.mrb[6].mxu0 %vm583_vm0, %v1076_v26 }
 0x43a   : > { %1468 = vmatprep.mubr.msk.f32.mxu0 %vm583_vm0, %v1077_v27 }
 0x43d   : > { %1469 = vmatmul.mubr.msk.f32.gmra.mrb[8].mxu0 %vm583_vm0, %v1078_v29 }
 0x508   : > { %v1464_v35 = vpop.f32.mrb[4].mxu0  ;;  %v1473_v36 = vpop.f32.mrb[4].mxu1 }
 0x509   : > { %v1255_v37 = vadd.f32 %v1473_v36, %v1127_v32  ;;  %v1219_v38 = vpop.f32.mrb[5].mxu0  ;;  %v1249_v39 = vpop.f32.mrb[5].mxu1  ;;  %v1225_v7 = vadd.f32 %v1464_v35, %v1097_v59 }
 0x50a   : > { %v1250_v40 = vadd.f32 %v1249_v39, %v1122_v33  ;;  %v1220_v9 = vadd.f32 %v1219_v38, %v1092_v60 }
 0x50b   : > { %v1381_v41 = vmul.f32 -1.442695, %v1255_v37 }
 0x50c   : > { %v1380_v43 = vmul.f32 -1.442695, %v1250_v40  ;;  %v1467_v45 = vpop.f32.mrb[6].mxu0 }
 0x50d   : > { %1563 = vpow2.f32 %v1381_v41  ;;  %v1229_v46 = vpop.f32.mrb[7].mxu0  ;;  %v1235_v58 = vadd.f32 %v1467_v45, %v1107_v55 }
 0x50e   : > { %1565 = vpow2.f32 %v1380_v43  ;;  %v1230_v1 = vadd.f32 %v1229_v46, %v1102_v56 }
 0x510   : > { %v1470_v44 = vpop.f32.mrb[8].mxu0 }
 0x511   : > { %v1245_v42 = vadd.f32 %v1470_v44, %v1117_v30  ;;  %v1239_v47 = vpop.f32.mrb[9].mxu0 }
 0x512   : > { %v1240_v48 = vadd.f32 %v1239_v47, %v1112_v31 }
 0x513   : > { %v1379_v49 = vmul.f32 -1.442695, %v1245_v42 }
 0x514   : > { %v1378_v50 = vmul.f32 -1.442695, %v1240_v48 }
 0x515   : > { %1567 = vpow2.f32 %v1379_v49 }
 0x516   : > { %1569 = vpow2.f32 %v1378_v50 }
 0x517   : > { %v1564_v51 = vpop.eup %1563 }
 0x518   : > { %v1566_v52 = vpop.eup %1565  ;;  %v1273_v53 = vadd.f32 1.0, %v1564_v51 }
 0x519   : > { %v1272_v54 = vadd.f32 1.0, %v1566_v52 }
 0x51a   : > { %1571 = vrcp.f32 %v1273_v53 }
 0x51b   : > { %1573 = vrcp.f32 %v1272_v54 }
 0x51f   : > { %v1568_v61 = vpop.eup %1567 }
 0x520   : > { %v1570_v62 = vpop.eup %1569  ;;  %v1271_v63 = vadd.f32 1.0, %v1568_v61 }
 0x521   : > { %v1270_v57 = vadd.f32 1.0, %v1570_v62 }
 0x522   : > { %1575 = vrcp.f32 %v1271_v63 }
 0x523   : > { %1577 = vrcp.f32 %v1270_v57 }
 0x524   : > { %v1572_v0 = vpop.eup %1571 }
 0x525   : > { %v1574_v3 = vpop.eup %1573  ;;  %v1285_v5 = vmul.f32 %v1572_v0, %v1235_v58 }
 0x526   : > { %v1284_v4 = vmul.f32 %v1574_v3, %v1230_v1 }
 0x527   : > { %v1289_v2 = vadd.f32 %v1285_v5, %v1764_v34 }
 0x528   : > { %v1288_v6 = vadd.f32 %v1284_v4, %v1756_v28 }
 0x529   : > { %1293 = vst.msk [vmem:[%s440_s15 + $0x18] sm:$0xff] %vm449_vm1, %v1289_v2 }
 0x52a   : > { %1292 = vst.msk [vmem:[%s440_s15 + $0x10] sm:$0xff] %vm449_vm1, %v1288_v6 }
 0x52c   : > { %v1576_v8 = vpop.eup %1575 }
 0x52d   : > { %v1578_v10 = vpop.eup %1577  ;;  %v1283_v11 = vmul.f32 %v1576_v8, %v1225_v7 }
 0x52e   : > { %v1282_v12 = vmul.f32 %v1578_v10, %v1220_v9 }
 0x52f   : > { %v1287_v13 = vadd.f32 %v1283_v11, %v1746_v23 }
 0x530   : > { %v1286_v14 = vadd.f32 %v1282_v12, %v1744_v22 }
 0x531   : > { %1291 = vst.msk [vmem:[%s440_s15 + $0x8] sm:$0xff] %vm449_vm1, %v1287_v13 }
 0x532   : > { %1290 = vst.msk [vmem:[%s440_s15] sm:$0xff] %vm449_vm1, %v1286_v14 }
 0x533 PF: > { %s23_s25 = sadd.s32 1, %s1585_s25  }
 0x534   : > { %p20_p4 = scmp.ge.s32.totalorder %s23_s25, 4  }
 0x536   :  { %22 = sbr.rel (!%p20_p4) target bundleno = 1 (0x1), region = 102 }

</bundles_post_ra>
